<compile_context>
chip_gen: v5e
topology: v5e:2x2
jax: 0.10.0
libtpu: 0.0.40
codegen_flags: <defaults>
</compile_context>

<pallas_src>
import jax
import jax.numpy as jnp
from jax import lax
from jax.experimental import pallas as pl
from jax.experimental.pallas import tpu as pltpu

_LANE = 128
_SUBLANE = 8

_EXP_SCALE = {"id": 0.0, "exp": 1.0, "exp_half": 0.5}


def _round_up(x, m):
    return ((x + m - 1) // m) * m


def _cdiv(a, b):
    return -(-a // b)


# ---------------------------------------------------------------------------
# Kernel: h = relu(x @ W1_all + b1_all); z = h @ W2_all + b2_all;
#         exp-epilogue applied to static column segments of z.
# ---------------------------------------------------------------------------
def _make_fused_kernel(exp_segments):
    """exp_segments: static tuple of (start_col, stop_col, scale).
    Columns in an exp segment get exp(scale * z); all other columns identity."""

    def kernel(x_ref, w1_ref, b1_ref, w2_ref, b2_ref, out_ref):
        # fc1 of every packed net in one MXU pass; bias + ReLU in f32 (VPU).
        h = jnp.dot(x_ref[...], w1_ref[...], preferred_element_type=jnp.float32)
        h = jnp.maximum(h + b1_ref[...], 0.0)
        # Every second-layer head packed into one lane-dense MXU pass.
        z = jnp.dot(h, w2_ref[...], preferred_element_type=jnp.float32)
        z = z + b2_ref[...]
        if exp_segments:
            col = lax.broadcasted_iota(jnp.int32, z.shape, 1)
            scale = jnp.zeros(z.shape, jnp.float32)
            for start, stop, s in exp_segments:
                seg = (col >= start) & (col < stop)
                scale = jnp.where(seg, s, scale)
            # exp lands on the EUP; masked-out columns use scale=0 -> exp(0)=1,
            # discarded by the select (no overflow, no NaN).
            z = jnp.where(scale > 0.0, jnp.exp(z * scale), z)
        out_ref[...] = z.astype(out_ref.dtype)

    return kernel


# ---------------------------------------------------------------------------
# One-time parameter packing (hoisted OUT of the forward path).
# ---------------------------------------------------------------------------
def prepare_fused_params(nets):
    """nets: sequence of (w1, b1, heads) with torch nn.Linear layouts:
         w1: (hidden, in_dim), b1: (hidden,)
         heads: sequence of (w, b, kind), w: (out_dim, hidden), b: (out_dim,)
         kind in {"id", "exp", "exp_half"}.
    All nets must share in_dim.  Returns packed parameters for ONE fused
    pallas_call that evaluates every head of every net."""
    in_dim = int(nets[0][0].shape[1])

    # Stack fc1 hidden bands side by side.
    hid_offs, hid_dims = [], []
    off = 0
    for w1, _, _ in nets:
        assert int(w1.shape[1]) == in_dim, "all nets must share input_dim"
        hid_offs.append(off)
        hid_dims.append(int(w1.shape[0]))
        off += int(w1.shape[0])
    h_total = off

    # Pack every head's columns contiguously; pad total width to a lane multiple.
    head_meta = []  # (net_idx, col_off, out_dim, kind, w, b)
    coff = 0
    for ni, (_, _, heads) in enumerate(nets):
        for w, b, kind in heads:
            head_meta.append((ni, coff, int(w.shape[0]), kind, w, b))
            coff += int(w.shape[0])
    n_p = max(_LANE, _round_up(coff, _LANE))

    # fc1 slab (in_dim, h_total) + bias row.
    w1_all = jnp.zeros((in_dim, h_total), jnp.float32)
    b1_all = jnp.zeros((1, h_total), jnp.float32)
    for (w1, b1, _), ho, hd in zip(nets, hid_offs, hid_dims):
        w1_all = w1_all.at[:, ho:ho + hd].set(jnp.asarray(w1, jnp.float32).T)
        b1_all = b1_all.at[0, ho:ho + hd].set(jnp.asarray(b1, jnp.float32))

    # fc2 slab (h_total, n_p): block-structured so each head only touches its
    # own net's hidden band; all other rows stay zero.
    w2_all = jnp.zeros((h_total, n_p), jnp.float32)
    b2_all = jnp.zeros((1, n_p), jnp.float32)
    exp_segments = []
    for ni, co, od, kind, w, b in head_meta:
        ho, hd = hid_offs[ni], hid_dims[ni]
        w2_all = w2_all.at[ho:ho + hd, co:co + od].set(jnp.asarray(w, jnp.float32).T)
        b2_all = b2_all.at[0, co:co + od].set(jnp.asarray(b, jnp.float32))
        s = _EXP_SCALE[kind]
        if s > 0.0:
            exp_segments.append((co, co + od, s))

    return {
        "w1": w1_all, "b1": b1_all, "w2": w2_all, "b2": b2_all,
        "in_dim": in_dim, "h_total": h_total, "n_p": n_p,
        "head_cols": tuple((co, od) for _, co, od, _, _, _ in head_meta),
        "exp_segments": tuple(exp_segments),
    }


# ---------------------------------------------------------------------------
# Forward wrapper: one pallas_call for every packed head.
# ---------------------------------------------------------------------------
def fused_mlp_forward(x, params, tb=None, single_tile_max_rows=1024):
    """Runs every packed head in ONE pallas_call and returns a tuple of
    per-head arrays (padding sliced off lazily after the call)."""
    B, in_dim = x.shape
    assert in_dim == params["in_dim"]
    x = jnp.asarray(x, jnp.float32)
    w1, b1, w2, b2 = params["w1"], params["b1"], params["w2"], params["b2"]
    n_p = params["n_p"]
    kernel = _make_fused_kernel(params["exp_segments"])

    # --- tiling choice -----------------------------------------------------
    tiling = None
    if tb is not None or B > single_tile_max_rows:
        tb = 256 if tb is None else tb
        tb = max(_SUBLANE, _round_up(tb, _SUBLANE))
        if _round_up(B, _SUBLANE) > tb:
            nb = _cdiv(B, tb)
            if nb % 2 == 1:           # even split across v7x's two TensorCores
                nb += 1
                tb = max(_SUBLANE, _round_up(_cdiv(B, nb), _SUBLANE))
                nb = _cdiv(B, tb)
            tiling = (tb, nb)

    if tiling is None:
        # No grid, no glue: full-array blocks are legal for any B (the
        # "equals the full array dim" exception), so x is passed untouched.
        grid = ()
        bp = B
        x_in = x
        row_map = lambda: (0, 0)
        const_map = lambda: (0, 0)
        x_block = (B, in_dim)
        out_block = (B, n_p)
        const_kw = {}
        compiler_params = None
    else:
        tb, nb = tiling
        bp = tb * nb
        x_in = x if bp == B else jnp.zeros((bp, in_dim), jnp.float32).at[:B].set(x)
        grid = (nb,)
        row_map = lambda i: (i, 0)        # x / output advance over batch tiles
        const_map = lambda i: (0, 0)      # weights / biases DMA'd once
        x_block = (tb, in_dim)
        out_block = (tb, n_p)
        # Constant-index blocks never change -> single-buffer them (VMEM lever
        # for v7x's smaller VMEM if layer dims are ever scaled up).
        const_kw = {"pipeline_mode": pl.Buffered(1)}
        compiler_params = pltpu.CompilerParams(
            dimension_semantics=("parallel",))   # megacore sharding on v7x

    in_specs = [
        pl.BlockSpec(x_block, row_map),
        pl.BlockSpec(w1.shape, const_map, **const_kw),
        pl.BlockSpec(b1.shape, const_map, **const_kw),
        pl.BlockSpec(w2.shape, const_map, **const_kw),
        pl.BlockSpec(b2.shape, const_map, **const_kw),
    ]
    out_spec = pl.BlockSpec(out_block, row_map)

    packed = pl.pallas_call(
        kernel,
        out_shape=jax.ShapeDtypeStruct((bp, n_p), jnp.float32),
        grid=grid,
        in_specs=in_specs,
        out_specs=out_spec,
        compiler_params=compiler_params,
    )(x_in, w1, b1, w2, b2)

    return tuple(packed[:B, co:co + od] for co, od in params["head_cols"])


# ---------------------------------------------------------------------------
# Per-network / fully-fused forwards (same machinery, different packing).
# ---------------------------------------------------------------------------
def main_network_forward(x, main_params, **kw):
    (logits,) = fused_mlp_forward(x, main_params, **kw)
    return logits


def reconstruction_network_forward(x, recon_params, **kw):
    (var,) = fused_mlp_forward(x, recon_params, **kw)
    return var


def regularization_network_forward(x, reg_params, **kw):
    mean, std = fused_mlp_forward(x, reg_params, **kw)
    return mean, std


def smil_subnetworks_forward(x, smil_params, **kw):
    """All three SMIL sub-network forwards (main logits, reconstruction var,
    regularization mean/std) on the same input in ONE pallas_call."""
    return fused_mlp_forward(x, smil_params, **kw)


# ---------------------------------------------------------------------------
# Reference (plain JAX) and deterministic init.
# ---------------------------------------------------------------------------
def _xavier_uniform(key, fan_out, fan_in, dtype=jnp.float32):
    limit = float(jnp.sqrt(6.0 / (fan_in + fan_out)))
    return jax.random.uniform(key, (fan_out, fan_in), dtype,
                              minval=-limit, maxval=limit)


def _reference_net(x, net):
    w1, b1, heads = net
    h = jnp.maximum(x @ w1.T + b1, 0.0)
    outs = []
    for w, b, kind in heads:
        z = h @ w.T + b
        if kind == "exp":
            z = jnp.exp(z)
        elif kind == "exp_half":
            z = jnp.exp(0.5 * z)
        outs.append(z)
    return tuple(outs)


if __name__ == "__main__":
    # Small shapes consistent with the module (8-class classifier head).
    B, input_dim, hidden_dim, output_dim, num_priors = 8, 32, 64, 8, 16

    key = jax.random.PRNGKey(0)
    kx, kx2, kx3, km1, km2, kr1, kr2, kg1, kg2, kg3 = jax.random.split(key, 10)

    x = jax.random.normal(kx, (B, input_dim), jnp.float32)

    # --- deterministic init: xavier_uniform weights, zero biases ------------
    m_w1 = _xavier_uniform(km1, hidden_dim, input_dim)
    m_b1 = jnp.zeros((hidden_dim,), jnp.float32)
    m_w2 = _xavier_uniform(km2, output_dim, hidden_dim)
    m_b2 = jnp.zeros((output_dim,), jnp.float32)
    main_net = (m_w1, m_b1, ((m_w2, m_b2, "id"),))

    r_w1 = _xavier_uniform(kr1, hidden_dim, input_dim)
    r_b1 = jnp.zeros((hidden_dim,), jnp.float32)
    r_wv = _xavier_uniform(kr2, num_priors, hidden_dim)
    r_bv = jnp.zeros((num_priors,), jnp.float32)
    recon_net = (r_w1, r_b1, ((r_wv, r_bv, "exp"),))

    g_w1 = _xavier_uniform(kg1, hidden_dim, input_dim)
    g_b1 = jnp.zeros((hidden_dim,), jnp.float32)
    g_wm = _xavier_uniform(kg2, input_dim, hidden_dim)
    g_bm = jnp.zeros((input_dim,), jnp.float32)
    g_wv = _xavier_uniform(kg3, input_dim, hidden_dim)
    g_bv = jnp.zeros((input_dim,), jnp.float32)
    reg_net = (g_w1, g_b1, ((g_wm, g_bm, "id"), (g_wv, g_bv, "exp_half")))

    # One-time packing (hoisted out of the forward path).
    smil_params = prepare_fused_params((main_net, recon_net, reg_net))
    main_params = prepare_fused_params((main_net,))
    recon_params = prepare_fused_params((recon_net,))
    reg_params = prepare_fused_params((reg_net,))

    # --- fully-fused forward: one pallas_call for all three sub-networks ----
    logits, var, mean, std = smil_subnetworks_forward(x, smil_params)
    jax.block_until_ready((logits, var, mean, std))

    (logits_ref,) = _reference_net(x, main_net)
    (var_ref,) = _reference_net(x, recon_net)
    mean_ref, std_ref = _reference_net(x, reg_net)

    assert logits.shape == (B, output_dim)
    assert var.shape == (B, num_priors)
    assert mean.shape == (B, input_dim) and std.shape == (B, input_dim)
    assert jnp.allclose(logits, logits_ref, rtol=1e-5, atol=1e-5)
    assert jnp.allclose(var, var_ref, rtol=1e-5, atol=1e-5)
    assert jnp.allclose(mean, mean_ref, rtol=1e-5, atol=1e-5)
    assert jnp.allclose(std, std_ref, rtol=1e-5, atol=1e-5)

    # --- per-network forwards (needed by SMILModel's per-sample routing) ----
    logits_sep = main_network_forward(x, main_params)
    var_sep = reconstruction_network_forward(x, recon_params)
    mean_sep, std_sep = regularization_network_forward(x, reg_params)
    jax.block_until_ready((logits_sep, var_sep, mean_sep, std_sep))
    assert jnp.allclose(logits_sep, logits_ref, rtol=1e-5, atol=1e-5)
    assert jnp.allclose(var_sep, var_ref, rtol=1e-5, atol=1e-5)
    assert jnp.allclose(mean_sep, mean_ref, rtol=1e-5, atol=1e-5)
    assert jnp.allclose(std_sep, std_ref, rtol=1e-5, atol=1e-5)

    # --- medium batch: single-tile fast path, grid=(), zero glue ------------
    xm = jax.random.normal(kx2, (300, input_dim), jnp.float32)
    lm, vm, mm, sm = smil_subnetworks_forward(xm, smil_params)   # grid=()
    jax.block_until_ready((lm, vm, mm, sm))
    (lm_ref,) = _reference_net(xm, main_net)
    (vm_ref,) = _reference_net(xm, recon_net)
    mm_ref, sm_ref = _reference_net(xm, reg_net)
    assert vm.shape == (300, num_priors)
    assert jnp.allclose(lm, lm_ref, rtol=1e-5, atol=1e-5)
    assert jnp.allclose(vm, vm_ref, rtol=1e-5, atol=1e-5)
    assert jnp.allclose(mm, mm_ref, rtol=1e-5, atol=1e-5)
    assert jnp.allclose(sm, sm_ref, rtol=1e-5, atol=1e-5)

    # --- larger batch: exercises the even-split "parallel" row grid ---------
    xb = jax.random.normal(kx3, (600, input_dim), jnp.float32)
    lb, vb, mb, sb = smil_subnetworks_forward(xb, smil_params, tb=128)
    # tb=128 -> nb=5 (odd) -> rebalanced to tb=104, grid=(6,) (even for v7x).
    jax.block_until_ready((lb, vb, mb, sb))
    (lb_ref,) = _reference_net(xb, main_net)
    (vb_ref,) = _reference_net(xb, recon_net)
    mb_ref, sb_ref = _reference_net(xb, reg_net)
    assert lb.shape == (600, output_dim)
    assert jnp.allclose(lb, lb_ref, rtol=1e-5, atol=1e-5)
    assert jnp.allclose(vb, vb_ref, rtol=1e-5, atol=1e-5)
    assert jnp.allclose(mb, mb_ref, rtol=1e-5, atol=1e-5)
    assert jnp.allclose(sb, sb_ref, rtol=1e-5, atol=1e-5)

    # TODO(synk): SMILModel.forward's per-sample modality_missing routing,
    # torch.randn_like sampling in reconstruct(), the softplus regularizer
    # mixing and the Adam / meta-training loop are stochastic, data-dependent
    # host glue around these deterministic sub-network kernels; not kernelized.
    print("KERNEL_OK")
</pallas_src>

<mosaic_0001>
module attributes {stable_mosaic.version = 11 : i64} {
  func.func @kernel(%arg0: memref<8x32xf32, #tpu.memory_space<vmem>>, %arg1: memref<32x192xf32, #tpu.memory_space<vmem>>, %arg2: memref<1x192xf32, #tpu.memory_space<vmem>>, %arg3: memref<192x128xf32, #tpu.memory_space<vmem>>, %arg4: memref<1x128xf32, #tpu.memory_space<vmem>>, %arg5: memref<8x128xf32, #tpu.memory_space<vmem>>) attributes {dimension_semantics = [], scalar_prefetch = 0 : i64, scratch_operands = 0 : i64, tpu.core_type = #tpu.core_type<tc>} {
    %c0 = arith.constant 0 : index
    %c0_0 = arith.constant 0 : index
    %0 = vector.load %arg0[%c0, %c0_0] : memref<8x32xf32, #tpu.memory_space<vmem>>, vector<8x32xf32>
    %c0_1 = arith.constant 0 : index
    %c0_2 = arith.constant 0 : index
    %1 = vector.load %arg1[%c0_1, %c0_2] : memref<32x192xf32, #tpu.memory_space<vmem>>, vector<32x192xf32>
    %cst = arith.constant dense<0.000000e+00> : vector<8x192xf32>
    %2 = tpu.matmul %0, %1, %cst {dimension_numbers = #tpu.dot_dimension_numbers<[1], [0], [0], [1], [0, 0, 1, 1], [], []>} : vector<8x32xf32>, vector<32x192xf32>, vector<8x192xf32> -> vector<8x192xf32>
    %c0_3 = arith.constant 0 : index
    %c0_4 = arith.constant 0 : index
    %3 = vector.load %arg2[%c0_3, %c0_4] : memref<1x192xf32, #tpu.memory_space<vmem>>, vector<1x192xf32>
    %4 = vector.broadcast %3 : vector<1x192xf32> to vector<8x192xf32>
    %5 = arith.addf %2, %4 : vector<8x192xf32>
    %cst_5 = arith.constant 0.000000e+00 : f32
    %6 = vector.broadcast %cst_5 : f32 to vector<8x192xf32>
    %7 = arith.maximumf %5, %6 : vector<8x192xf32>
    %c0_6 = arith.constant 0 : index
    %c0_7 = arith.constant 0 : index
    %8 = vector.load %arg3[%c0_6, %c0_7] : memref<192x128xf32, #tpu.memory_space<vmem>>, vector<192x128xf32>
    %cst_8 = arith.constant dense<0.000000e+00> : vector<8x128xf32>
    %9 = tpu.matmul %7, %8, %cst_8 {dimension_numbers = #tpu.dot_dimension_numbers<[1], [0], [0], [1], [0, 0, 1, 1], [], []>} : vector<8x192xf32>, vector<192x128xf32>, vector<8x128xf32> -> vector<8x128xf32>
    %c0_9 = arith.constant 0 : index
    %c0_10 = arith.constant 0 : index
    %10 = vector.load %arg4[%c0_9, %c0_10] : memref<1x128xf32, #tpu.memory_space<vmem>>, vector<1x128xf32>
    %11 = vector.broadcast %10 : vector<1x128xf32> to vector<8x128xf32>
    %12 = arith.addf %9, %11 : vector<8x128xf32>
    %13 = tpu.iota {dimensions = array<i32: 1>} : vector<8x128xi32>
    %cst_11 = arith.constant 0.000000e+00 : f32
    %14 = vector.broadcast %cst_11 : f32 to vector<8x128xf32>
    %c8_i32 = arith.constant 8 : i32
    %15 = vector.broadcast %c8_i32 : i32 to vector<8x128xi32>
    %16 = arith.cmpi sge, %13, %15 : vector<8x128xi32>
    %c24_i32 = arith.constant 24 : i32
    %17 = vector.broadcast %c24_i32 : i32 to vector<8x128xi32>
    %18 = arith.cmpi slt, %13, %17 : vector<8x128xi32>
    %19 = arith.andi %16, %18 : vector<8x128xi1>
    %cst_12 = arith.constant 1.000000e+00 : f32
    %20 = vector.broadcast %cst_12 : f32 to vector<8x128xf32>
    %21 = arith.select %19, %20, %14 : vector<8x128xi1>, vector<8x128xf32>
    %c56_i32 = arith.constant 56 : i32
    %22 = vector.broadcast %c56_i32 : i32 to vector<8x128xi32>
    %23 = arith.cmpi sge, %13, %22 : vector<8x128xi32>
    %c88_i32 = arith.constant 88 : i32
    %24 = vector.broadcast %c88_i32 : i32 to vector<8x128xi32>
    %25 = arith.cmpi slt, %13, %24 : vector<8x128xi32>
    %26 = arith.andi %23, %25 : vector<8x128xi1>
    %cst_13 = arith.constant 5.000000e-01 : f32
    %27 = vector.broadcast %cst_13 : f32 to vector<8x128xf32>
    %28 = arith.select %26, %27, %21 : vector<8x128xi1>, vector<8x128xf32>
    %cst_14 = arith.constant 0.000000e+00 : f32
    %29 = vector.broadcast %cst_14 : f32 to vector<8x128xf32>
    %30 = arith.cmpf ogt, %28, %29 : vector<8x128xf32>
    %31 = arith.mulf %12, %28 : vector<8x128xf32>
    %32 = math.exp %31 : vector<8x128xf32>
    %33 = arith.select %30, %32, %12 : vector<8x128xi1>, vector<8x128xf32>
    %c0_15 = arith.constant 0 : index
    %c0_16 = arith.constant 0 : index
    %34 = vector.load %arg5[%c0_15, %c0_16] : memref<8x128xf32, #tpu.memory_space<vmem>>, vector<8x128xf32>
    tpu.vector_store %arg5[%c0_15, %c0_16], %33 {strides = array<i32>} : memref<8x128xf32, #tpu.memory_space<vmem>>, vector<8x128xf32>,
    return
  }
}

</mosaic_0001>

<bundles_post_ra>
// kernel: tpu_custom_call.1
= control target key start
LH: loop header
LB: loop body
LE: loop exit
PB: predicated region body
PF: predicated region fallthrough
CT: control target
= control target key end

     0   :  { %10 = vsyncpa [#allocation3], 0  ;;  %s450_s0 = inlined_call_operand.hbm [shape: f32[8,32], index: 0, kind: input, shape index: {}]   ;;  %s451_s1 = inlined_call_operand.hbm [shape: f32[32,192], index: 1, kind: input, shape index: {}]   ;;  %s452_s2 = inlined_call_operand.hbm [shape: f32[1,192], index: 2, kind: input, shape index: {}]   ;;  %s453_s3 = inlined_call_operand.hbm [shape: f32[192,128], index: 3, kind: input, shape index: {}]   ;;  %s454_s4 = inlined_call_operand.vmem [shape: f32[1,128], index: 4, kind: input, shape index: {}]   ;;  %s455_s5 = inlined_call_operand.hbm [shape: f32[8,128], index: 5, kind: output, shape index: {}]  }
   0x1   :  { %11 = vsyncpa [#allocation6], 0 }
   0x2   :  { %12 = vsyncpa [#allocation9], 0  ;;  %s29_s20 = sshll.u32 %s451_s1, 4  ;;  %s30_s20 = int_to_ptr.hbm [resolvable:$true] %s29_s20 }
   0x3   :  { %13 = vsyncpa [#allocation4], 0  ;;  %s392_s21 = smov [#allocation5]   ;;  %s19_s25 = sshll.u32 %s450_s0, 4  ;;  %s20_s25 = int_to_ptr.hbm [resolvable:$true] %s19_s25 }
   0x4   :  { %s31_s22 = sshll.u32 %s392_s21, 4  ;;  %s393_s26 = smov 256   ;;  %s32_s22 = int_to_ptr.vmem [resolvable:$true] %s31_s22 }
   0x5   :  { %s394_s27 = smov 16   ;;  %s395_s28 = smov [#allocation2]  }
   0x6   :  { %37 = dma.hbm_to_vmem [thread:$0]  %s30_s20, 1024, %s32_s22, [#allocation6], %s393_s26, %s393_s26, %s394_s27  }
   0x7   :  { %s21_s29 = sshll.u32 %s395_s28, 4  ;;  %s43_s7 = sshll.u32 %s452_s2, 4  ;;  %s22_s29 = int_to_ptr.vmem [resolvable:$true] %s21_s29  ;;  %s44_s7 = int_to_ptr.hbm [resolvable:$true] %s43_s7 }
   0x8   :  { %24 = dma.hbm_to_vmem [thread:$0]  %s20_s25, 128, %s22_s29, [#allocation3]  }
   0x9   :  { %s53_s9 = sshll.u32 %s453_s3, 4  ;;  %s396_s10 = smov [#allocation7]   ;;  %s54_s9 = int_to_ptr.hbm [resolvable:$true] %s53_s9 }
   0xa   :  { %s45_s11 = sshll.u32 %s396_s10, 4  ;;  %s397_s0 = smov [#allocation8]   ;;  %s46_s11 = int_to_ptr.vmem [resolvable:$true] %s45_s11 }
   0xb   :  { %48 = dma.hbm_to_vmem [thread:$0]  %s44_s7, 32, %s46_s11, [#allocation6]  }
   0xc   :  { %s55_s12 = sshll.u32 %s397_s0, 4  ;;  %s398_s13 = smov 128   ;;  %s56_s12 = int_to_ptr.vmem [resolvable:$true] %s55_s12 }
   0xd   :  { %s399_s14 = smov 8  }
   0xe   :  { %61 = dma.hbm_to_vmem [thread:$0]  %s54_s9, 3072, %s56_s12, [#allocation9], %s398_s13, %s398_s13, %s399_s14  }
   0xf   :  { %384 = dma.done.wait [#allocation3], 128  }
  0x10   :  { %385 = vsyncadd [#allocation3], 4294967168 }
  0x11   :  { %386 = dma.done.wait [#allocation6], 1056  }
  0x12   :  { %387 = vsyncadd [#allocation6], 4294966240 }
  0x13   :  { %388 = dma.done.wait [#allocation9], 3072  }
  0x14   :  { %389 = vsyncadd [#allocation9], 4294964224  ;;  %v87_v0 = vld [vmem:[#allocation5 + $0x30] sm:$0xff]  ;;  %v85_v1 = vld [vmem:[#allocation5 + $0x20] sm:$0xff]  ;;  %vm95_vm0 = vcmask 261120   ;;  %vm169_vm1 = vcmask 523264   ;;  %v213_v42 = vlaneseq }
  0x15   :  { %v88_v2 = vld [vmem:[#allocation5 + $0x38] sm:$0xff]  ;;  %111 = vmatpush.msra.mxu0 %v87_v0  ;;  %v86_v3 = vld [vmem:[#allocation5 + $0x28] sm:$0xff]  ;;  %v83_v4 = vld [vmem:[#allocation5 + $0x10] sm:$0xff]  ;;  %v400_v45 = vmov 0.0   ;;  %s401_s15 = smov [#allocation10]   ;;  %s236_s19 = sshll.u32 %s455_s5, 4  ;;  %s237_s19 = int_to_ptr.hbm [resolvable:$true] %s236_s19 }
  0x16   :  { %131 = vmatpush.msra.mxu1 %v88_v2  ;;  %v84_v5 = vld [vmem:[#allocation5 + $0x18] sm:$0xff]  ;;  %v81_v8 = vld [vmem:[#allocation5] sm:$0xff]  ;;  %v82_v9 = vld [vmem:[#allocation5 + $0x8] sm:$0xff]  ;;  %v214_v43 = vand.u32 127, %v213_v42  ;;  %s234_s16 = sshll.u32 %s401_s15, 4  ;;  %s235_s16 = int_to_ptr.vmem [resolvable:$true] %s234_s16 }
  0x17   :  { %112 = vmatpush.msra.mxu0 %v85_v1  ;;  %v156_v6 = vld [vmem:[#allocation8 + $0x78] sm:$0xff]  ;;  %v155_v7 = vld [vmem:[#allocation8 + $0x70] sm:$0xff]  ;;  %v154_v11 = vld [vmem:[#allocation8 + $0x68] sm:$0xff] }
  0x18   :  { %132 = vmatpush.msra.mxu1 %v86_v3  ;;  %173 = vmatpush.msra.mxu2 %v156_v6  ;;  %v80_v10 = vld [vmem:[#allocation2] sm:$0xff]  ;;  %v153_v13 = vld [vmem:[#allocation8 + $0x60] sm:$0xff]  ;;  %v162_v16 = vld [vmem:[#allocation8 + $0xa8] sm:$0xff]  ;;  %vm215_vm2 = vcmp.ge.s32.totalorder %v214_v43, 8  ;;  %vm216_vm3 = vcmp.lt.s32.totalorder %v214_v43, 24  ;;  %vm219_vm5 = vcmp.ge.s32.totalorder %v214_v43, 56 }
  0x19   :  { %113 = vmatpush.msra.mxu0 %v83_v4  ;;  %v164_v12 = vld [vmem:[#allocation8 + $0xb8] sm:$0xff]  ;;  %v163_v14 = vld [vmem:[#allocation8 + $0xb0] sm:$0xff]  ;;  %v161_v18 = vld [vmem:[#allocation8 + $0xa0] sm:$0xff]  ;;  %vm220_vm6 = vcmp.lt.s32.totalorder %v214_v43, 88 }
  0x1a   :  { %133 = vmatpush.msra.mxu1 %v84_v5  ;;  %174 = vmatpush.msra.mxu2 %v155_v7  ;;  %v152_v15 = vld [vmem:[#allocation8 + $0x58] sm:$0xff]  ;;  %v151_v17 = vld [vmem:[#allocation8 + $0x50] sm:$0xff]  ;;  %v150_v19 = vld [vmem:[#allocation8 + $0x48] sm:$0xff] }
  0x1b   :  { %114 = vmatpush.msra.mxu0 %v81_v8  ;;  %201 = vmatpush.msra.mxu3 %v164_v12  ;;  %v149_v20 = vld [vmem:[#allocation8 + $0x40] sm:$0xff]  ;;  %v148_v21 = vld [vmem:[#allocation8 + $0x38] sm:$0xff]  ;;  %v147_v22 = vld [vmem:[#allocation8 + $0x30] sm:$0xff] }
  0x1c   :  { %134 = vmatpush.msra.mxu1 %v82_v9  ;;  %248 = vmatmul.msk.f32.vlgmr.msra.gmra.mxu0 %vm95_vm0, %v80_v10  ;;  %v146_v23 = vld [vmem:[#allocation8 + $0x28] sm:$0xff]  ;;  %v145_v24 = vld [vmem:[#allocation8 + $0x20] sm:$0xff]  ;;  %v144_v25 = vld [vmem:[#allocation8 + $0x18] sm:$0xff] }
  0x1d   :  { %249 = vmatmul.msk.f32.vlgmr.msra.gmra.mxu1 %vm95_vm0, %v80_v10  ;;  %175 = vmatpush.msra.mxu2 %v154_v11  ;;  %v143_v26 = vld [vmem:[#allocation8 + $0x10] sm:$0xff]  ;;  %v160_v27 = vld [vmem:[#allocation8 + $0x98] sm:$0xff]  ;;  %v142_v28 = vld [vmem:[#allocation8 + $0x8] sm:$0xff] }
  0x1e   :  { %202 = vmatpush.msra.mxu3 %v163_v14  ;;  %v159_v29 = vld [vmem:[#allocation8 + $0x90] sm:$0xff]  ;;  %v141_v30 = vld [vmem:[#allocation8] sm:$0xff]  ;;  %v158_v31 = vld [vmem:[#allocation8 + $0x88] sm:$0xff] }
  0x1f   :  { %176 = vmatpush.msra.mxu2 %v153_v13  ;;  %v157_v32 = vld [vmem:[#allocation8 + $0x80] sm:$0xff]  ;;  %v89_v33 = vld [vmem:[#allocation7] sm:$0x3]  ;;  %vm217_vm4 = vmand %vm215_vm2, %vm216_vm3 }
  0x20   :  { %203 = vmatpush.msra.mxu3 %v162_v16  ;;  %v91_v34 = vperm.slane %v89_v33, 0  ;;  %v92_v35 = vperm.slane %v89_v33, 1  ;;  %v261_v44 = vld [vmem:[%s454_s4] ss:$0 sm:$0xff]  ;;  %v218_v46 = vsel %vm217_vm4, 1.0, %v400_v45  ;;  %vm221_vm7 = vmand %vm219_vm5, %vm220_vm6 }
  0x21   :  { %177 = vmatpush.msra.mxu2 %v152_v15  ;;  %v222_v50 = vsel %vm221_vm7, 0.5, %v218_v46 }
  0x22   :  { %204 = vmatpush.msra.mxu3 %v161_v18  ;;  %vm223_vm8 = vcmp.gt.f32.partialorder %v222_v50, 0.0 }
  0x23   :  { %178 = vmatpush.msra.mxu2 %v151_v17 }
  0x24   :  { %205 = vmatpush.msra.mxu3 %v160_v27 }
  0x25   :  { %179 = vmatpush.msra.mxu2 %v150_v19 }
  0x26   :  { %206 = vmatpush.msra.mxu3 %v159_v29 }
  0x27   :  { %180 = vmatpush.msra.mxu2 %v149_v20 }
  0x28   :  { %207 = vmatpush.msra.mxu3 %v158_v31 }
  0x29   :  { %181 = vmatpush.msra.mxu2 %v148_v21 }
  0x2a   :  { %208 = vmatpush.msra.mxu3 %v157_v32 }
  0x2b   :  { %182 = vmatpush.msra.mxu2 %v147_v22 }
  0x2d   :  { %183 = vmatpush.msra.mxu2 %v146_v23 }
  0x2f   :  { %184 = vmatpush.msra.mxu2 %v145_v24 }
  0x31   :  { %185 = vmatpush.msra.mxu2 %v144_v25 }
  0x33   :  { %186 = vmatpush.msra.mxu2 %v143_v26 }
  0x35   :  { %187 = vmatpush.msra.mxu2 %v142_v28 }
  0x37   :  { %188 = vmatpush.msra.mxu2 %v141_v30 }
  0x99   :  { %v116_v36 = vpop.f32.mrf.mxu0 }
  0x9a   :  { %v136_v37 = vpop.f32.mrf.mxu1  ;;  %v117_v38 = vadd.f32 %v116_v36, %v91_v34 }
  0x9b   :  { %v137_v39 = vadd.f32 %v136_v37, %v92_v35 }
  0x9c   :  { %v139_v40 = vmax.f32 %v117_v38, 0.0 }
  0x9d   :  { %v140_v41 = vmax.f32 %v137_v39, 0.0 }
  0x9e   :  { %189 = vmatmul.f32.vlgmr.msra.gmra.mxu2 %v139_v40 }
  0x9f   :  { %250 = vmatmul.msk.f32.vlgmr.msra.gmra.mxu3 %vm169_vm1, %v140_v41 }
 0x121   :  { %v190_v47 = vpop.f32.mrf.mxu2 }
 0x122   :  { %v210_v48 = vpop.f32.mrf.mxu3  ;;  %v191_v49 = vadd.f32 %v261_v44, %v190_v47 }
 0x124   :  { %v211_v51 = vadd.f32 %v210_v48, %v191_v49 }
 0x126   :  { %v224_v52 = vmul.f32 %v222_v50, %v211_v51 }
 0x128   :  { %v225_v53 = vmul.f32 1.442695, %v224_v52 }
 0x12a   :  { %262 = vpow2.f32 %v225_v53 }
 0x130   :  { %v263_v54 = vpop.eup %262 }
 0x131   :  { %v227_v55 = vsel %vm223_vm8, %v263_v54, %v211_v51 }
 0x132   :  { %228 = vst [vmem:[#allocation10] sm:$0xff] %v227_v55 }
 0x133   :  { %239 = dma.vmem_to_hbm [thread:$0]  %s235_s16, 128, %s237_s19, [#allocation4]  }
 0x134   :  { %390 = dma.done.wait [#allocation4], 128  }
 0x135   :  { %391 = vsyncadd [#allocation4], 4294967168 }
 0x136   :  { %244 = vsyncpa [#allocation3], 1 }
 0x137   :  { %245 = vsyncpa [#allocation6], 1 }
 0x138   :  { %246 = vsyncpa [#allocation9], 1 }
 0x139   :  { %247 = vsyncpa [#allocation4], 1 }

</bundles_post_ra>
